<compile_context>
chip_gen: v5e
topology: v5e:2x2
jax: 0.10.0
libtpu: 0.0.40
codegen_flags: <defaults>
</compile_context>

<pallas_src>
import jax
import jax.numpy as jnp
from jax.experimental import pallas as pl
from jax.experimental.pallas import tpu as pltpu


def _lerror_kernel(x_ref, w_ref, b_ref, g_ref, beta_ref, out_ref):
    # x_ref : (TILE_R, in_len)          streamed per grid step
    # w_ref : (in_len, 2*out_len)       resident packed [W1 | W2_eff]
    # b_ref : (1, 2*out_len)            resident packed [b1 | b2]
    # g_ref, beta_ref : (1, out_len)    resident LayerNorm affine
    out_len = out_ref.shape[-1]

    # Single fused MXU matmul, f32 accumulation.
    yz = jnp.dot(x_ref[...], w_ref[...], preferred_element_type=jnp.float32)
    yz = yz + b_ref[...]

    y = jnp.maximum(yz[:, :out_len], 0.0)
    e = jnp.maximum(yz[:, out_len:], 0.0)
    z = y + e                                          # dropout == identity (eval)

    # LayerNorm over last dim (out_len), eps = 1e-5, biased variance (f32).
    mean = jnp.mean(z, axis=-1, keepdims=True)
    cent = z - mean
    var = jnp.mean(cent * cent, axis=-1, keepdims=True)
    zn = cent * jax.lax.rsqrt(var + 1e-5)

    out_ref[...] = (zn * g_ref[...] + beta_ref[...]).astype(out_ref.dtype)


def lerror_forward(x_seq, params):
    """x_seq: (B, in_len, data_dim) float32 -> (B, out_len, data_dim) float32."""
    w1, b1, w2, b2, gamma, beta = params
    B, in_len, data_dim = x_seq.shape
    out_len = w1.shape[1]
    n3 = in_len - 3

    # --- fold diff^3 into W2:  diff^3(x) == x @ S with S (in_len, n3) ---
    # d3[:, j] = x[:, j+3] - 3 x[:, j+2] + 3 x[:, j+1] - x[:, j]
    S = (-jnp.eye(in_len, n3, 0, dtype=jnp.float32)
         + 3.0 * jnp.eye(in_len, n3, -1, dtype=jnp.float32)
         - 3.0 * jnp.eye(in_len, n3, -2, dtype=jnp.float32)
         + jnp.eye(in_len, n3, -3, dtype=jnp.float32))
    w2_eff = S @ w2                                     # (in_len, out_len)

    # Pack both Linears into one wide matmul operand.
    w_cat = jnp.concatenate([w1, w2_eff], axis=1)       # (in_len, 2*out_len)
    b_cat = jnp.concatenate([b1, b2], axis=1)           # (1, 2*out_len)

    # b l d -> b d l, flatten rows. (kept: data_dim < 128, see TODO above)
    x2d = jnp.transpose(x_seq, (0, 2, 1)).reshape(B * data_dim, in_len)
    R = B * data_dim

    # Row tile: multiple of 8 sublanes. 512 rows is conservative for v7x's
    # 32 MiB scoped VMEM (2 bufs * 512 * in_len * 4B each side) while being
    # large enough to hit ~85% of the HBM roofline on v5e/v6e.
    TILE_R = 512
    if R < TILE_R:
        TILE_R = ((R + 7) // 8) * 8
    R_pad = ((R + TILE_R - 1) // TILE_R) * TILE_R
    if R_pad != R:
        x2d = jnp.pad(x2d, ((0, R_pad - R), (0, 0)))

    grid = (R_pad // TILE_R,)
    resident = lambda shape: pl.BlockSpec(shape, lambda i: (0, 0))

    out2d = pl.pallas_call(
        _lerror_kernel,
        out_shape=jax.ShapeDtypeStruct((R_pad, out_len), jnp.float32),
        grid=grid,
        in_specs=[
            pl.BlockSpec((TILE_R, in_len), lambda i: (i, 0)),   # x: streamed
            resident((in_len, 2 * out_len)),                    # packed weights
            resident((1, 2 * out_len)),                         # packed biases
            resident((1, out_len)),                             # gamma
            resident((1, out_len)),                             # beta
        ],
        out_specs=pl.BlockSpec((TILE_R, out_len), lambda i: (i, 0)),
        compiler_params=pltpu.CompilerParams(
            dimension_semantics=("parallel",)),                 # megacore sharding
    )(x2d, w_cat, b_cat, gamma, beta)

    out2d = out2d[:R]
    # (B*d, out_len) -> (B, d, out_len) -> b d l -> b l d
    return jnp.transpose(out2d.reshape(B, data_dim, out_len), (0, 2, 1))


def init_params(key, in_len, out_len):
    """Deterministic parameter init mimicking torch.nn.Linear default (U(-k, k))."""
    k1, k2, k3, k4 = jax.random.split(key, 4)
    lim1 = 1.0 / jnp.sqrt(in_len)
    lim2 = 1.0 / jnp.sqrt(in_len - 3)
    # store weights as (in_features, out_features) so the kernel does x @ W
    w1 = jax.random.uniform(k1, (in_len, out_len), jnp.float32, -lim1, lim1)
    b1 = jax.random.uniform(k2, (1, out_len), jnp.float32, -lim1, lim1)
    w2 = jax.random.uniform(k3, (in_len - 3, out_len), jnp.float32, -lim2, lim2)
    b2 = jax.random.uniform(k4, (1, out_len), jnp.float32, -lim2, lim2)
    gamma = jnp.ones((1, out_len), jnp.float32)
    beta = jnp.zeros((1, out_len), jnp.float32)
    return (w1, b1, w2, b2, gamma, beta)


def _reference(x_seq, params):
    """Pure-JAX reference for correctness checking (explicit diff^3, two matmuls)."""
    w1, b1, w2, b2, gamma, beta = params
    x = jnp.transpose(x_seq, (0, 2, 1))                    # (B, D, L)
    y = jnp.maximum(x @ w1 + b1[0], 0.0)
    d3 = jnp.diff(jnp.diff(jnp.diff(x, axis=2), axis=2), axis=2)
    e = jnp.maximum(d3 @ w2 + b2[0], 0.0)
    z = y + e
    mean = jnp.mean(z, axis=-1, keepdims=True)
    var = jnp.mean((z - mean) ** 2, axis=-1, keepdims=True)
    zn = (z - mean) / jnp.sqrt(var + 1e-5)
    out = zn * gamma[0] + beta[0]
    return jnp.transpose(out, (0, 2, 1))                   # (B, out_len, D)


if __name__ == "__main__":
    key = jax.random.PRNGKey(0)
    kx, kp = jax.random.split(key)

    B, in_len, data_dim, out_len = 2, 16, 4, 8
    x_seq = jax.random.normal(kx, (B, in_len, data_dim), jnp.float32)
    params = init_params(kp, in_len, out_len)

    fwd = jax.jit(lerror_forward)
    out = jax.block_until_ready(fwd(x_seq, params))
    ref = jax.block_until_ready(_reference(x_seq, params))

    assert out.shape == (B, out_len, data_dim), out.shape
    max_err = float(jnp.max(jnp.abs(out - ref)))
    assert jnp.allclose(out, ref, atol=1e-4, rtol=1e-4), max_err
    print("KERNEL_OK")
</pallas_src>

<mosaic_0001>
module attributes {stable_mosaic.version = 11 : i64} {
  func.func @_lerror_kernel(%arg0: i32, %arg1: memref<8x16xf32, #tpu.memory_space<vmem>>, %arg2: memref<16x16xf32, #tpu.memory_space<vmem>>, %arg3: memref<1x16xf32, #tpu.memory_space<vmem>>, %arg4: memref<1x8xf32, #tpu.memory_space<vmem>>, %arg5: memref<1x8xf32, #tpu.memory_space<vmem>>, %arg6: memref<8x8xf32, #tpu.memory_space<vmem>>) attributes {dimension_semantics = [#tpu.dimension_semantics<parallel>], iteration_bounds = array<i64: 1>, scalar_prefetch = 0 : i64, scratch_operands = 0 : i64, tpu.core_type = #tpu.core_type<tc>, window_params = [{transform_indices = @transform_0, window_bounds = array<i64: 8, 16>}, {pipeline_mode = #tpu.pipeline_mode<synchronous>, transform_indices = @transform_1, window_bounds = array<i64: 16, 16>}, {pipeline_mode = #tpu.pipeline_mode<synchronous>, transform_indices = @transform_2, window_bounds = array<i64: 1, 16>}, {pipeline_mode = #tpu.pipeline_mode<synchronous>, transform_indices = @transform_3, window_bounds = array<i64: 1, 8>}, {pipeline_mode = #tpu.pipeline_mode<synchronous>, transform_indices = @transform_4, window_bounds = array<i64: 1, 8>}, {transform_indices = @transform_5, window_bounds = array<i64: 8, 8>}]} {
    %c0 = arith.constant 0 : index
    %c0_0 = arith.constant 0 : index
    %0 = vector.load %arg1[%c0, %c0_0] : memref<8x16xf32, #tpu.memory_space<vmem>>, vector<8x16xf32>
    %c0_1 = arith.constant 0 : index
    %c0_2 = arith.constant 0 : index
    %1 = vector.load %arg2[%c0_1, %c0_2] : memref<16x16xf32, #tpu.memory_space<vmem>>, vector<16x16xf32>
    %cst = arith.constant dense<0.000000e+00> : vector<8x16xf32>
    %2 = tpu.matmul %0, %1, %cst {dimension_numbers = #tpu.dot_dimension_numbers<[1], [0], [0], [1], [0, 0, 1, 1], [], []>} : vector<8x16xf32>, vector<16x16xf32>, vector<8x16xf32> -> vector<8x16xf32>
    %c0_3 = arith.constant 0 : index
    %c0_4 = arith.constant 0 : index
    %3 = vector.load %arg3[%c0_3, %c0_4] : memref<1x16xf32, #tpu.memory_space<vmem>>, vector<1x16xf32>
    %4 = vector.broadcast %3 : vector<1x16xf32> to vector<8x16xf32>
    %5 = arith.addf %2, %4 : vector<8x16xf32>
    %6 = vector.extract_strided_slice %5 {offsets = [0, 0], sizes = [8, 8], strides = [1, 1]} : vector<8x16xf32> to vector<8x8xf32>
    %cst_5 = arith.constant 0.000000e+00 : f32
    %7 = vector.broadcast %cst_5 : f32 to vector<8x8xf32>
    %8 = arith.maximumf %6, %7 : vector<8x8xf32>
    %9 = vector.extract_strided_slice %5 {offsets = [0, 8], sizes = [8, 8], strides = [1, 1]} : vector<8x16xf32> to vector<8x8xf32>
    %cst_6 = arith.constant 0.000000e+00 : f32
    %10 = vector.broadcast %cst_6 : f32 to vector<8x8xf32>
    %11 = arith.maximumf %9, %10 : vector<8x8xf32>
    %12 = arith.addf %8, %11 : vector<8x8xf32>
    %cst_7 = arith.constant dense<0.000000e+00> : vector<8xf32>
    %13 = vector.multi_reduction <add>, %12, %cst_7 [1] : vector<8x8xf32> to vector<8xf32>
    %14 = vector.shape_cast %13 : vector<8xf32> to vector<8x1xf32>
    %cst_8 = arith.constant 8.000000e+00 : f32
    %15 = vector.broadcast %cst_8 : f32 to vector<8x1xf32>
    %16 = arith.divf %14, %15 : vector<8x1xf32>
    %17 = vector.broadcast %16 : vector<8x1xf32> to vector<8x8xf32>
    %18 = arith.subf %12, %17 : vector<8x8xf32>
    %19 = arith.mulf %18, %18 : vector<8x8xf32>
    %cst_9 = arith.constant dense<0.000000e+00> : vector<8xf32>
    %20 = vector.multi_reduction <add>, %19, %cst_9 [1] : vector<8x8xf32> to vector<8xf32>
    %21 = vector.shape_cast %20 : vector<8xf32> to vector<8x1xf32>
    %cst_10 = arith.constant 8.000000e+00 : f32
    %22 = vector.broadcast %cst_10 : f32 to vector<8x1xf32>
    %23 = arith.divf %21, %22 : vector<8x1xf32>
    %cst_11 = arith.constant 9.99999974E-6 : f32
    %24 = vector.broadcast %cst_11 : f32 to vector<8x1xf32>
    %25 = arith.addf %23, %24 : vector<8x1xf32>
    %26 = math.rsqrt %25 : vector<8x1xf32>
    %27 = vector.broadcast %26 : vector<8x1xf32> to vector<8x8xf32>
    %28 = arith.mulf %18, %27 : vector<8x8xf32>
    %c0_12 = arith.constant 0 : index
    %c0_13 = arith.constant 0 : index
    %29 = vector.load %arg4[%c0_12, %c0_13] : memref<1x8xf32, #tpu.memory_space<vmem>>, vector<1x8xf32>
    %30 = vector.broadcast %29 : vector<1x8xf32> to vector<8x8xf32>
    %31 = arith.mulf %28, %30 : vector<8x8xf32>
    %c0_14 = arith.constant 0 : index
    %c0_15 = arith.constant 0 : index
    %32 = vector.load %arg5[%c0_14, %c0_15] : memref<1x8xf32, #tpu.memory_space<vmem>>, vector<1x8xf32>
    %33 = vector.broadcast %32 : vector<1x8xf32> to vector<8x8xf32>
    %34 = arith.addf %31, %33 : vector<8x8xf32>
    %c0_16 = arith.constant 0 : index
    %c0_17 = arith.constant 0 : index
    %35 = vector.load %arg6[%c0_16, %c0_17] : memref<8x8xf32, #tpu.memory_space<vmem>>, vector<8x8xf32>
    tpu.vector_store %arg6[%c0_16, %c0_17], %34 {strides = array<i32>} : memref<8x8xf32, #tpu.memory_space<vmem>>, vector<8x8xf32>,
    return
  }
  func.func @transform_0(%arg0: i32) -> (i32, i32) {
    %c0_i32 = arith.constant 0 : i32
    %c0_i32_0 = arith.constant 0 : i32
    return %arg0, %c0_i32 : i32, i32
  }
  func.func @transform_1(%arg0: i32) -> (i32, i32) {
    %c0_i32 = arith.constant 0 : i32
    %c0_i32_0 = arith.constant 0 : i32
    %c0_i32_1 = arith.constant 0 : i32
    return %c0_i32, %c0_i32_0 : i32, i32
  }
  func.func @transform_2(%arg0: i32) -> (i32, i32) {
    %c0_i32 = arith.constant 0 : i32
    %c0_i32_0 = arith.constant 0 : i32
    %c0_i32_1 = arith.constant 0 : i32
    return %c0_i32, %c0_i32_0 : i32, i32
  }
  func.func @transform_3(%arg0: i32) -> (i32, i32) {
    %c0_i32 = arith.constant 0 : i32
    %c0_i32_0 = arith.constant 0 : i32
    %c0_i32_1 = arith.constant 0 : i32
    return %c0_i32, %c0_i32_0 : i32, i32
  }
  func.func @transform_4(%arg0: i32) -> (i32, i32) {
    %c0_i32 = arith.constant 0 : i32
    %c0_i32_0 = arith.constant 0 : i32
    %c0_i32_1 = arith.constant 0 : i32
    return %c0_i32, %c0_i32_0 : i32, i32
  }
  func.func @transform_5(%arg0: i32) -> (i32, i32) {
    %c0_i32 = arith.constant 0 : i32
    %c0_i32_0 = arith.constant 0 : i32
    return %arg0, %c0_i32 : i32, i32
  }
}

</mosaic_0001>

<bundles_post_ra>
// kernel: lerror_forward.1
= control target key start
LH: loop header
LB: loop body
LE: loop exit
PB: predicated region body
PF: predicated region fallthrough
CT: control target
= control target key end

     0   :  { %vm28_vm0 = vcmask 130048   ;;  %s209_s0 = inlined_call_operand.vmem [shape: f32[8,16], index: 0, kind: input, shape index: {}]   ;;  %s210_s1 = inlined_call_operand.vmem [shape: f32[16,16], index: 1, kind: input, shape index: {}]   ;;  %s211_s2 = inlined_call_operand.vmem [shape: f32[1,16], index: 2, kind: input, shape index: {}]   ;;  %s212_s3 = inlined_call_operand.vmem [shape: f32[1,8], index: 3, kind: input, shape index: {}]   ;;  %s213_s4 = inlined_call_operand.vmem [shape: f32[1,8], index: 4, kind: input, shape index: {}]   ;;  %s214_s5 = inlined_call_operand.hbm [shape: f32[8,8], index: 5, kind: output, shape index: {}]  }
   0x1   :  { %v23_v0 = vld [vmem:[%s210_s1 + $0x8] sm:$0xff]  ;;  %v22_v1 = vld [vmem:[%s210_s1] sm:$0xff] }
   0x2   :  { %46 = vmatpush.msra.mxu0 %v23_v0  ;;  %v21_v2 = vld [vmem:[%s209_s0] sm:$0xff] }
   0x3   :  { %10 = vsyncpa [#allocation3], 0  ;;  %v119_v3 = vld [vmem:[%s211_s2] ss:$0 sm:$0xff]  ;;  %s152_s26 = smov 120   ;;  %vm58_vm1 = vcmask 64512  }
   0x4   :  { %47 = vmatpush.msra.mxu0 %v22_v1  ;;  %v153_v10 = vmov 8.0   ;;  %v120_v31 = vld [vmem:[%s212_s3] ss:$0 sm:$0xff]  ;;  %s154_s28 = smov [#allocation2]   ;;  %s106_s7 = sshll.u32 %s214_s5, 4  ;;  %s107_s7 = int_to_ptr.hbm [resolvable:$true] %s106_s7 }
   0x5   :  { %115 = vmatmul.msk.f32.vlgmr.msra.gmra.mxu0 %vm28_vm0, %v21_v2  ;;  %122 = vrcp.f32 %v153_v10  ;;  %v121_v34 = vld [vmem:[%s213_s4] ss:$0 sm:$0xff]  ;;  %s104_s29 = sshll.u32 %s154_s28, 4  ;;  %s105_s29 = int_to_ptr.vmem [resolvable:$true] %s104_s29 }
   0xb   :  { %v123_v11 = vpop.eup %122 }
   0xc   :  { %v63_v12 = vmul.f32 8.0, %v123_v11  ;;  %vm67_vm2 = vweird.f32 %v123_v11 }
   0xe   :  { %v64_v13 = vsub.f32 1.0, %v63_v12 }
  0x10   :  { %v65_v14 = vmul.f32 %v123_v11, %v64_v13 }
  0x12   :  { %v66_v15 = vadd.f32 %v123_v11, %v65_v14 }
  0x14   :  { %v68_v16 = vsel %vm67_vm2, %v123_v11, %v66_v15 }
  0x82   :  { %v49_v4 = vpop.f32.mrf.mxu0 }
  0x83   :  { %v50_v5 = vadd.f32 %v119_v3, %v49_v4 }
  0x85   :  { %v52_v6 = vmax.f32 %v50_v5, 0.0 }
  0x87   :  { %54 = vrot.lane.b32.xlu0 %v52_v6, %s152_s26 }
  0xf9   :  { %v55_v7 = vpop.permute.xlu0 %54 }
  0xfa   :  { %v57_v8 = vadd.f32 %v55_v7, %v52_v6 }
  0xfc   :  { %v59_v9 = vsel %vm58_vm1, %v57_v8, 0.0 }
  0xfd   :  { %60 = vadd.xlane.f32.xlu0 %v59_v9 }
 0x170   :  { %v61_v17 = vpop.xlane.xlu0 %60 }
 0x171   :  { %v69_v18 = vmul.f32 %v68_v16, %v61_v17 }
 0x173   :  { %v70_v19 = vsub.f32 %v57_v8, %v69_v18 }
 0x175   :  { %v71_v20 = vmul.f32 %v70_v19, %v70_v19 }
 0x177   :  { %v72_v21 = vsel %vm58_vm1, %v71_v20, 0.0 }
 0x178   :  { %73 = vadd.xlane.f32.xlu1 %v72_v21 }
 0x1eb   :  { %v74_v22 = vpop.xlane.xlu1 %73 }
 0x1ec   :  { %v75_v23 = vmul.f32 %v74_v22, %v68_v16 }
 0x1ee   :  { %v76_v24 = vadd.f32 1e-05, %v75_v23 }
 0x1f0   :  { %124 = vrsqrt.f32 %v76_v24  ;;  %vm83_vm4 = vweird.f32 %v76_v24 }
 0x1f6   :  { %v125_v25 = vpop.eup %124 }
 0x1f7   :  { %v78_v26 = vmul.f32 %v125_v25, %v76_v24  ;;  %vm84_vm3 = vweird.f32 %v125_v25 }
 0x1f8   :  { %vm85_vm5 = vmor %vm83_vm4, %vm84_vm3 }
 0x1f9   :  { %v79_v27 = vmul.f32 %v125_v25, %v78_v26 }
 0x1fb   :  { %v80_v28 = vmul.f32 0.5, %v79_v27 }
 0x1fd   :  { %v81_v29 = vsub.f32 1.5, %v80_v28 }
 0x1ff   :  { %v82_v30 = vmul.f32 %v125_v25, %v81_v29 }
 0x201   :  { %v86_v32 = vsel %vm85_vm5, %v125_v25, %v82_v30 }
 0x202   :  { %v87_v33 = vmul.f32 %v86_v32, %v70_v19 }
 0x204   :  { %v92_v35 = vmul.f32 %v120_v31, %v87_v33 }
 0x206   :  { %v97_v36 = vadd.f32 %v121_v34, %v92_v35 }
 0x208   :  { %98 = vst.msk [vmem:[#allocation2] sm:$0xff] %vm58_vm1, %v97_v36 }
 0x209   :  { %109 = dma.vmem_to_hbm [thread:$0]  %s105_s29, 128, %s107_s7, [#allocation3]  }
 0x20a   :  { %150 = dma.done.wait [#allocation3], 128  }
 0x20b   :  { %151 = vsyncadd [#allocation3], 4294967168 }
 0x20c   :  { %114 = vsyncpa [#allocation3], 1 }

</bundles_post_ra>
